<compile_context>
chip_gen: v7x
topology: tpu7x:2x2x1
jax: 0.10.0
libtpu: 0.0.40
codegen_flags: <defaults>
</compile_context>

<pallas_src>
import functools

import jax
import jax.numpy as jnp
from jax.experimental import pallas as pl
from jax.experimental.pallas import tpu as pltpu


# ----------------------------------------------------------------------------
# Schedule (deterministic, no checkpoint load)
# ----------------------------------------------------------------------------
def get_beta_schedule(schedule, train_timesteps):
    if schedule == "linear":
        return jnp.linspace(1e-4, 0.02, train_timesteps, dtype=jnp.float32)
    elif schedule == "quad":
        return jnp.linspace(1e-4 ** 0.5, 0.02 ** 0.5, train_timesteps,
                            dtype=jnp.float32) ** 2
    else:
        raise ValueError(f"unknown schedule {schedule}")


# ----------------------------------------------------------------------------
# Pallas kernels
#   grid = (n_tiles, b); program_id(1) is the batch index for the SMEM coefs.
#
# Folded (clip_sample=False):    out = A*x + B*z (+ C*noise)
#   A = sqrt(acp)/sqrt(ac), B = grad_coef - A*sqrt(1-ac), C = std_dev_t*eta
# Clip (clip_sample=True): explicit x0 estimate, clamp, then recombine.
# ----------------------------------------------------------------------------
def _ddim_fold_kernel(coef_ref, x_ref, z_ref, out_ref):
    b = pl.program_id(1)
    a_c = coef_ref[b, 0]
    b_c = coef_ref[b, 1]
    x = x_ref[...].astype(jnp.float32)
    z = z_ref[...].astype(jnp.float32)
    out_ref[...] = (a_c * x + b_c * z).astype(out_ref.dtype)


def _ddim_fold_noise_kernel(coef_ref, x_ref, z_ref, n_ref, out_ref):
    b = pl.program_id(1)
    a_c = coef_ref[b, 0]
    b_c = coef_ref[b, 1]
    c_c = coef_ref[b, 2]
    x = x_ref[...].astype(jnp.float32)
    z = z_ref[...].astype(jnp.float32)
    n = n_ref[...].astype(jnp.float32)
    out_ref[...] = (a_c * x + b_c * z + c_c * n).astype(out_ref.dtype)


def _ddim_clip_kernel(coef_ref, x_ref, z_ref, out_ref):
    b = pl.program_id(1)
    inv_sqrt_ac = coef_ref[b, 0]
    om_ac_sqrt = coef_ref[b, 1]
    sqrt_acp = coef_ref[b, 2]
    grad_coef = coef_ref[b, 3]
    x = x_ref[...].astype(jnp.float32)
    z = z_ref[...].astype(jnp.float32)
    x0 = jnp.clip((x - om_ac_sqrt * z) * inv_sqrt_ac, -1.0, 1.0)
    out_ref[...] = (sqrt_acp * x0 + grad_coef * z).astype(out_ref.dtype)


def _ddim_clip_noise_kernel(coef_ref, x_ref, z_ref, n_ref, out_ref):
    b = pl.program_id(1)
    inv_sqrt_ac = coef_ref[b, 0]
    om_ac_sqrt = coef_ref[b, 1]
    sqrt_acp = coef_ref[b, 2]
    grad_coef = coef_ref[b, 3]
    noise_coef = coef_ref[b, 4]
    x = x_ref[...].astype(jnp.float32)
    z = z_ref[...].astype(jnp.float32)
    n = n_ref[...].astype(jnp.float32)
    x0 = jnp.clip((x - om_ac_sqrt * z) * inv_sqrt_ac, -1.0, 1.0)
    out_ref[...] = (sqrt_acp * x0 + grad_coef * z
                    + noise_coef * n).astype(out_ref.dtype)


# ----------------------------------------------------------------------------
# Layout planning: lane-dense, sublane-aligned, VMEM-safe, no ragged tile.
# ----------------------------------------------------------------------------
def _round_up(x, m):
    return (x + m - 1) // m * m


def _tpu_vmem_capacity_bytes():
    try:
        info = pltpu.get_tpu_info()
        return int(getattr(info, "vmem_capacity_bytes", 64 << 20))
    except Exception:
        return 64 << 20   # conservative (v7x-sized) fallback


def _plan_layout(total_elems, itemsize, target_bytes):
    """Return (rows, lane_w, tile_rows, padded_total).

    Always produces lane_w a multiple of 128, rows a multiple of 8, and
    rows % tile_rows == 0 (padding the flat slab up if necessary), so every
    block is (tile_rows, lane_w)-shaped with unmasked lane-dense stores.
    """
    lane_w = None
    for cand in (1024, 512, 256, 128):
        if total_elems % cand == 0 and (total_elems // cand) % 8 == 0:
            lane_w = cand
            break
    if lane_w is None:
        # Pad path: pick a lane width and round the row count up to 8.
        lane_w = 512 if total_elems >= 512 * 8 else 128
    rows = _round_up(pl.cdiv(total_elems, lane_w), 8)

    max_rows = max(8, (target_bytes // (lane_w * itemsize)) // 8 * 8)
    if rows <= max_rows:
        tile_rows = rows
    else:
        tile_rows = max_rows
        if rows % tile_rows != 0:
            # Prefer a nearby exact divisor (multiple of 8); otherwise pad.
            tr = tile_rows
            while tr >= 8 and rows % tr != 0:
                tr -= 8
            if tr >= max(8, tile_rows // 2):
                tile_rows = tr
            else:
                rows = _round_up(rows, tile_rows)

    return rows, lane_w, tile_rows, rows * lane_w


# ----------------------------------------------------------------------------
# Sampler
# ----------------------------------------------------------------------------
class DDIMSampler:
    def __init__(self, num_timesteps=200, train_timesteps=1000,
                 clip_sample=False, schedule="linear"):
        self.num_timesteps = num_timesteps
        self.train_timesteps = train_timesteps
        self.ratio = train_timesteps // num_timesteps
        self.clip_sample = clip_sample
        self.schedule = schedule
        self.final_alpha_cumprod = jnp.array([1.0], dtype=jnp.float32)

        self.betas = get_beta_schedule(schedule, train_timesteps)
        self.betas_sqrt = jnp.sqrt(self.betas)
        self.alphas = 1.0 - self.betas
        self.alphas_cumprod = jnp.cumprod(self.alphas, axis=0)
        self.alphas_cumprod_sqrt = jnp.sqrt(self.alphas_cumprod)
        self.alphas_one_minus_cumprod_sqrt = jnp.sqrt(1.0 - self.alphas_cumprod)
        self.alphas_sqrt = jnp.sqrt(self.alphas)
        self.alphas_sqrt_recip = 1.0 / self.alphas_sqrt

    def __call__(self, x_t, t, z_t, ratio, eta=0.0, noise=None):
        return self.step(x_t, t, z_t, ratio, eta=eta, noise=noise)

    # ------------------------------------------------------------------
    # Per-batch scalar coefficients (tiny, plain JAX glue) -> (b, 5) f32
    #   [inv_sqrt_ac, sqrt(1-ac), sqrt(acp), grad_coef, noise_coef]
    # ------------------------------------------------------------------
    def _coefficients(self, t, ratio, eta):
        t = jnp.asarray(t, dtype=jnp.int32)
        t_full = t * jnp.int32(ratio)
        t_prev = t_full - jnp.int32(ratio)
        t_prev_safe = jnp.clip(t_prev, 0, self.train_timesteps - 1)

        ac = self.alphas_cumprod[t_full]                     # (b,)
        acp_raw = self.alphas_cumprod[t_prev_safe]           # (b,)
        acp = jnp.where(t_prev >= 0, acp_raw, 1.0)           # step() gate
        acp_std = jnp.where(t_prev > 0, acp_raw, 1.0)        # estimate_std() gate

        om_ac_sqrt = self.alphas_one_minus_cumprod_sqrt[t_full]
        inv_sqrt_ac = 1.0 / jnp.sqrt(ac)
        sqrt_acp = jnp.sqrt(acp)

        var = (1.0 - acp_std) / (1.0 - ac) * (1.0 - ac / acp_std)
        std_dev_t = eta * jnp.sqrt(var)

        # Clamp at 0 to avoid NaN for large eta (documented deviation).
        grad_coef = jnp.sqrt(jnp.maximum(1.0 - acp - std_dev_t ** 2, 0.0))
        # Faithful to the original module: noise is scaled by std_dev_t * eta
        # (eta applied twice), and only added when t_full > 0.
        noise_coef = jnp.where(t_full > 0, std_dev_t * eta, 0.0)

        return jnp.stack(
            [inv_sqrt_ac, om_ac_sqrt, sqrt_acp, grad_coef, noise_coef],
            axis=-1,
        ).astype(jnp.float32)                                # (b, 5)

    # ------------------------------------------------------------------
    # DDIM step — elementwise hot path in Pallas
    # ------------------------------------------------------------------
    def step(self, x_t, t, z_t, ratio, eta=0.0, noise=None,
             donate_x_t=False, force_pallas=False):
        # eta must be a static Python number (kernel specialization).
        eta = float(eta)
        ratio = int(ratio)

        b, c, h, w = z_t.shape
        total = c * h * w
        dtype = z_t.dtype
        itemsize = jnp.dtype(dtype).itemsize

        coefs5 = self._coefficients(t, ratio, eta)           # (b, 5)

        # TODO(synk): when eta != 0 and noise is None, the original module
        # draws torch.randn internally; here the caller must pass `noise`.
        use_noise = (noise is not None) and (eta != 0.0)

        # Tiny tensors: a pallas_call launch + per-step overhead dominates;
        # XLA's fused elementwise already hits roofline.  Bypass unless forced.
        if (not force_pallas) and b * total * itemsize < (1 << 20):
            return self._step_from_coefs(x_t, z_t, noise, coefs5, use_noise)

        # ---- fold scalars when we do not need an explicit clipped x0 ----
        if self.clip_sample:
            coefs = coefs5                                   # (b, 5)
        else:
            a_c = coefs5[:, 2] * coefs5[:, 0]                # sqrt(acp)/sqrt(ac)
            b_c = coefs5[:, 3] - a_c * coefs5[:, 1]          # grad - A*sqrt(1-ac)
            c_c = coefs5[:, 4]                               # std_dev_t * eta
            coefs = jnp.stack([a_c, b_c, c_c], axis=-1).astype(jnp.float32)

        # ---- chip-aware lane-dense layout & tiling ----
        vmem_cap = _tpu_vmem_capacity_bytes()
        target_bytes = (4 << 20) if vmem_cap >= (100 << 20) else (2 << 20)
        rows, lane_w, tile_rows, padded_total = _plan_layout(
            total, itemsize, target_bytes)
        n_tiles = rows // tile_rows
        pad = padded_total - total

        def to_slab(a):
            a = a.reshape(b, total)
            if pad:
                a = jnp.pad(a, ((0, 0), (0, pad)))
            return a.reshape(b, rows, lane_w)

        x3 = to_slab(x_t)
        z3 = to_slab(z_t)
        inputs = [coefs, x3, z3]
        if use_noise:
            inputs.append(to_slab(noise.astype(dtype)))
            kern = (_ddim_clip_noise_kernel if self.clip_sample
                    else _ddim_fold_noise_kernel)
        else:
            kern = _ddim_clip_kernel if self.clip_sample else _ddim_fold_kernel

        # grid = (n_tiles, b): big axis leads -> v7x megacore splits tiles
        # across both TensorCores even when b == 1.
        blk = pl.BlockSpec((1, tile_rows, lane_w), lambda i, j: (j, i, 0))
        in_specs = ([pl.BlockSpec(memory_space=pltpu.MemorySpace.SMEM)]
                    + [blk] * (len(inputs) - 1))

        n_streams = len(inputs)                  # VMEM inputs (- coefs) + output
        tile_bytes = tile_rows * lane_w * itemsize
        need = n_streams * 2 * tile_bytes        # double-buffered streams
        vmem_limit = int(min(int(0.75 * vmem_cap),
                             max(2 * need, 16 << 20)))

        flops_per_elem = (5 if self.clip_sample else 3) + (2 if use_noise else 0)
        cost = pl.CostEstimate(
            flops=int(flops_per_elem * b * padded_total),
            transcendentals=0,
            bytes_accessed=int(n_streams * b * padded_total * itemsize),
        )

        io_aliases = {}
        if donate_x_t and x3.dtype == dtype and pad == 0:
            io_aliases = {1: 0}

        out = pl.pallas_call(
            kern,
            out_shape=jax.ShapeDtypeStruct((b, rows, lane_w), dtype),
            grid=(n_tiles, b),
            in_specs=in_specs,
            out_specs=blk,
            input_output_aliases=io_aliases,
            compiler_params=pltpu.CompilerParams(
                dimension_semantics=("parallel", "parallel"),
                vmem_limit_bytes=vmem_limit,
            ),
            cost_estimate=cost,
        )(*inputs)

        out = out.reshape(b, padded_total)
        if pad:
            out = out[:, :total]
        return out.reshape(b, c, h, w)

    # ------------------------------------------------------------------
    # Plain-JAX path (same math) — tiny-tensor bypass & reference.
    # ------------------------------------------------------------------
    def _step_from_coefs(self, x_t, z_t, noise, coefs5, use_noise):
        b = z_t.shape[0]
        inv_sqrt_ac = coefs5[:, 0].reshape(b, 1, 1, 1)
        om_ac_sqrt = coefs5[:, 1].reshape(b, 1, 1, 1)
        sqrt_acp = coefs5[:, 2].reshape(b, 1, 1, 1)
        grad_coef = coefs5[:, 3].reshape(b, 1, 1, 1)
        noise_coef = coefs5[:, 4].reshape(b, 1, 1, 1)
        x32 = x_t.astype(jnp.float32)
        z32 = z_t.astype(jnp.float32)
        x0 = (x32 - om_ac_sqrt * z32) * inv_sqrt_ac
        if self.clip_sample:
            x0 = jnp.clip(x0, -1.0, 1.0)
        res = sqrt_acp * x0 + grad_coef * z32
        if use_noise:
            res = res + noise_coef * noise.astype(jnp.float32)
        return res.astype(z_t.dtype)

    def step_ref(self, x_t, t, z_t, ratio, eta=0.0, noise=None):
        coefs5 = self._coefficients(t, ratio, float(eta))
        use_noise = (noise is not None) and (float(eta) != 0.0)
        return self._step_from_coefs(x_t, z_t, noise, coefs5, use_noise)


if __name__ == "__main__":
    key = jax.random.PRNGKey(0)
    k1, k2, k3, k4, k5 = jax.random.split(key, 5)

    sampler = DDIMSampler(num_timesteps=200, train_timesteps=1000,
                          clip_sample=False, schedule="linear")

    b, c, h, w = 2, 4, 16, 16
    x_t = jax.random.normal(k1, (b, c, h, w), dtype=jnp.float32)
    z_t = jax.random.normal(k2, (b, c, h, w), dtype=jnp.float32)
    noise = jax.random.normal(k3, (b, c, h, w), dtype=jnp.float32)
    t = jnp.array([50, 3], dtype=jnp.int32)   # per-batch DDIM timestep indices

    # deterministic path (eta=0): folded 2-coef kernel, no noise stream
    prev = jax.block_until_ready(
        sampler.step(x_t, t, z_t, sampler.ratio, eta=0.0, force_pallas=True))
    ref = sampler.step_ref(x_t, t, z_t, sampler.ratio, eta=0.0)
    assert prev.shape == (b, c, h, w)
    assert jnp.allclose(prev, ref, atol=1e-5, rtol=1e-5)

    # stochastic path (eta>0) with explicit noise
    prev_eta = jax.block_until_ready(
        sampler.step(x_t, t, z_t, sampler.ratio, eta=0.5, noise=noise,
                     force_pallas=True))
    ref_eta = sampler.step_ref(x_t, t, z_t, sampler.ratio, eta=0.5, noise=noise)
    assert jnp.allclose(prev_eta, ref_eta, atol=1e-5, rtol=1e-5)

    # bf16 I/O: loads/stores in bf16, math in f32
    prev_bf = jax.block_until_ready(
        sampler.step(x_t.astype(jnp.bfloat16), t, z_t.astype(jnp.bfloat16),
                     sampler.ratio, eta=0.0, force_pallas=True))
    ref_bf = sampler.step_ref(x_t.astype(jnp.bfloat16), t,
                              z_t.astype(jnp.bfloat16), sampler.ratio, eta=0.0)
    assert prev_bf.dtype == jnp.bfloat16
    assert jnp.allclose(prev_bf.astype(jnp.float32),
                        ref_bf.astype(jnp.float32), atol=2e-2, rtol=2e-2)

    # non-128-divisible slab (3*10*10 = 300 elems): pad-to-lane-dense path
    c2, h2, w2 = 3, 10, 10
    x2 = jax.random.normal(k4, (b, c2, h2, w2), dtype=jnp.float32)
    z2 = jax.random.normal(k5, (b, c2, h2, w2), dtype=jnp.float32)
    prev2 = jax.block_until_ready(
        sampler.step(x2, t, z2, sampler.ratio, eta=0.0, force_pallas=True))
    ref2 = sampler.step_ref(x2, t, z2, sampler.ratio, eta=0.0)
    assert jnp.allclose(prev2, ref2, atol=1e-5, rtol=1e-5)

    # clip_sample=True path (explicit x0 clamp in-kernel)
    sampler_clip = DDIMSampler(clip_sample=True)
    prev_clip = jax.block_until_ready(
        sampler_clip.step(x_t, t, z_t, sampler_clip.ratio, eta=0.0,
                          force_pallas=True))
    ref_clip = sampler_clip.step_ref(x_t, t, z_t, sampler_clip.ratio, eta=0.0)
    assert jnp.allclose(prev_clip, ref_clip, atol=1e-5, rtol=1e-5)

    # tiny-tensor bypass path (plain fused jnp)
    prev_small = jax.block_until_ready(
        sampler.step(x_t, t, z_t, sampler.ratio, eta=0.0))
    assert jnp.allclose(prev_small, ref, atol=1e-5, rtol=1e-5)

    print("KERNEL_OK")
</pallas_src>

<mosaic_0001>
module attributes {stable_mosaic.version = 11 : i64} {
  func.func @_ddim_fold_kernel(%arg0: i32, %arg1: i32, %arg2: memref<2x3xf32, #tpu.memory_space<smem>>, %arg3: memref<1x8x128xf32, #tpu.memory_space<vmem>>, %arg4: memref<1x8x128xf32, #tpu.memory_space<vmem>>, %arg5: memref<1x8x128xf32, #tpu.memory_space<vmem>>) attributes {dimension_semantics = [#tpu.dimension_semantics<parallel>, #tpu.dimension_semantics<parallel>], iteration_bounds = array<i64: 1, 2>, scalar_prefetch = 0 : i64, scratch_operands = 0 : i64, tpu.core_type = #tpu.core_type<tc>, window_params = [{transform_indices = @transform_0, window_bounds = array<i64: 2, 3>}, {transform_indices = @transform_1, window_bounds = array<i64: 1, 8, 128>}, {transform_indices = @transform_2, window_bounds = array<i64: 1, 8, 128>}, {transform_indices = @transform_3, window_bounds = array<i64: 1, 8, 128>}]} {
    %0 = arith.index_cast %arg1 : i32 to index
    %c0 = arith.constant 0 : index
    %1 = memref.load %arg2[%0, %c0] : memref<2x3xf32, #tpu.memory_space<smem>>
    %2 = arith.index_cast %arg1 : i32 to index
    %c1 = arith.constant 1 : index
    %3 = memref.load %arg2[%2, %c1] : memref<2x3xf32, #tpu.memory_space<smem>>
    %c0_0 = arith.constant 0 : index
    %c0_1 = arith.constant 0 : index
    %c0_2 = arith.constant 0 : index
    %4 = vector.load %arg3[%c0_0, %c0_1, %c0_2] : memref<1x8x128xf32, #tpu.memory_space<vmem>>, vector<1x8x128xf32>
    %c0_3 = arith.constant 0 : index
    %c0_4 = arith.constant 0 : index
    %c0_5 = arith.constant 0 : index
    %5 = vector.load %arg4[%c0_3, %c0_4, %c0_5] : memref<1x8x128xf32, #tpu.memory_space<vmem>>, vector<1x8x128xf32>
    %6 = vector.broadcast %1 : f32 to vector<1x8x128xf32>
    %7 = arith.mulf %6, %4 : vector<1x8x128xf32>
    %8 = vector.broadcast %3 : f32 to vector<1x8x128xf32>
    %9 = arith.mulf %8, %5 : vector<1x8x128xf32>
    %10 = arith.addf %7, %9 : vector<1x8x128xf32>
    %c0_6 = arith.constant 0 : index
    %c0_7 = arith.constant 0 : index
    %c0_8 = arith.constant 0 : index
    %11 = vector.load %arg5[%c0_6, %c0_7, %c0_8] : memref<1x8x128xf32, #tpu.memory_space<vmem>>, vector<1x8x128xf32>
    tpu.vector_store %arg5[%c0_6, %c0_7, %c0_8], %10 {strides = array<i32>} : memref<1x8x128xf32, #tpu.memory_space<vmem>>, vector<1x8x128xf32>,
    return
  }
  func.func @transform_0(%arg0: i32, %arg1: i32) -> (i32, i32) {
    %c0_i32 = arith.constant 0 : i32
    %c0_i32_0 = arith.constant 0 : i32
    %c0_i32_1 = arith.constant 0 : i32
    return %c0_i32, %c0_i32_0 : i32, i32
  }
  func.func @transform_1(%arg0: i32, %arg1: i32) -> (i32, i32, i32) {
    %c0_i32 = arith.constant 0 : i32
    %c0_i32_0 = arith.constant 0 : i32
    return %arg1, %arg0, %c0_i32 : i32, i32, i32
  }
  func.func @transform_2(%arg0: i32, %arg1: i32) -> (i32, i32, i32) {
    %c0_i32 = arith.constant 0 : i32
    %c0_i32_0 = arith.constant 0 : i32
    return %arg1, %arg0, %c0_i32 : i32, i32, i32
  }
  func.func @transform_3(%arg0: i32, %arg1: i32) -> (i32, i32, i32) {
    %c0_i32 = arith.constant 0 : i32
    %c0_i32_0 = arith.constant 0 : i32
    return %arg1, %arg0, %c0_i32 : i32, i32, i32
  }
}

</mosaic_0001>

<bundles_post_ra>
// kernel: tpu_custom_call.1
= control target key start
LH: loop header
LB: loop body
LE: loop exit
PB: predicated region body
PF: predicated region fallthrough
CT: control target
= control target key end

     0   :  { %s944_s0 = inlined_call_operand.hbm [shape: f32[2,3], index: 0, kind: input, shape index: {}]   ;;  %s945_s1 = inlined_call_operand.hbm [shape: f32[2,8,128], index: 1, kind: input, shape index: {}]   ;;  %s946_s2 = inlined_call_operand.hbm [shape: f32[2,8,128], index: 2, kind: input, shape index: {}]   ;;  %s947_s3 = inlined_call_operand.hbm [shape: f32[2,8,128], index: 3, kind: output, shape index: {}]  }
   0x1   :  { %954 = sst [smem:[#allocation14_spill]] %s944_s0 }
   0x2   :  { %955 = sst [smem:[#allocation15_spill]] %s945_s1 }
   0x3   :  { %8 = vsyncpa [#allocation5], 0 }
   0x4   :  { %9 = vsyncpa [#allocation3], 0 }
   0x5   :  { %11 = vsyncpa [#allocation3 + $0x1], 0 }
   0x6   :  { %12 = vsyncpa [#allocation8], 0 }
   0x7   :  { %14 = vsyncpa [#allocation8 + $0x1], 0 }
   0x8   :  { %15 = vsyncpa [#allocation4], 0 }
   0x9   :  { %17 = vsyncpa [#allocation4 + $0x1], 0  ;;  %s684_s12 = smov 0   ;;  %s686_s13 = smov 0  }
   0xa   :  { %s688_s14 = smov 0   ;;  %s690_s15 = smov 0  }
   0xb   :  { %s692_s16 = smov 0   ;;  %s694_s17 = smov 0  }
   0xc LB: > { %s398_s18 = sadd.s32 4294967295, %s658_s17   ;;  %s399_s19 = sadd.s32 4294967294, %s658_s17   ;;  %s658_s17 = sphi %s694_s17, %s23_s17   ;;  %s654_s16 = sphi %s692_s16, %s978_s16   ;;  %s650_s15 = sphi %s690_s15, %s977_s15   ;;  %s646_s14 = sphi %s688_s14, %s976_s14   ;;  %s642_s13 = sphi %s686_s13, %s975_s13   ;;  %s638_s12 = sphi %s684_s12, %s974_s12  }
   0xd   : > { %p72_p0 = scmp.ne.s32.totalorder %s646_s14, %s642_s13  ;;  %p78_p1 = scmp.ne.s32.totalorder %s642_s13, %s638_s12 }
   0xe   : > { %p720_p2 = scmp.eq.s32.totalorder %s398_s18, 0  ;;  %p132_p3 = scmp.eq.s32.totalorder %s398_s18, 1 }
   0xf   : > { %p138_p4 = scmp.eq.s32.totalorder %s399_s19, 1  ;;  %p400_p5 = scmp.ge.s32.totalorder %s658_s17, 1 }
  0x10   : > { %s956_s20 = scalar_select %p720_p2, 1, 0 }
  0x11   : > { %p727_p6 = por %p720_p2, %p78_p1  ;;  %p734_p7 = por %p132_p3, %p72_p0 }
  0x12   : > { %p738_p8 = por %p138_p4, %p78_p1  ;;  %p145_p9 = scmp.lt.s32.totalorder %s658_s17, 3 }
  0x13   : > { %s957_s21 = scalar_select %p727_p6, 1, 0 }
  0x14   : > { %s958_s22 = scalar_select %p734_p7, 1, 0 }
  0x15   : > { %s959_s23 = scalar_select %p738_p8, 1, 0 }
  0x16   : > { %p743_p10 = pnand %p400_p5, %p145_p9  ;;  %s65_s25 = sadd.s32 1, %s646_s14 }
  0x17   : > { %s32_s26 = sadd.s32 1, %s654_s16  ;;  %p73_p13 = scmp.eq.s32.totalorder %s658_s17, 0 }
  0x18   : > { %s960_s24 = scalar_select %p743_p10, 1, 0 }
  0x19   : > { %p427_p12 = pneg %p743_p10  ;;  %p759_p1 = scmp.ge.s32.totalorder %s32_s26, 2 }
  0x1a   : > { %p766_p4 = por %p73_p13, %p72_p0  ;;  %p443_p5 = scmp.lt.s32.totalorder %s658_s17, 2 }
  0x1b   : > { %p755_p3 = pnand %p427_p12, %p720_p2  ;;  %s772_s30 = sand.u32 1, %s646_s14  }
  0x1c   : > { %s964_s0 = sld [smem:[#allocation14_spill]] }
  0x1d   : > { %p497_p12 = pneg %p755_p3 }
  0x22   : > { %s495_s6 = scalar_lea.hbm %s964_s0, 32 }
  0x23   : > { %p496_p9 = scmp.ne.s32.totalorder %s964_s0, %s495_s6  ;;  %p502_p0 = scmp.lt.u32.totalorder %s495_s6, %s964_s0 }
  0x25   : > { %p498_p11 = pnand %p497_p12, %p496_p9 }
  0x27   : > { %p499_p8 = pneg %p498_p11 }
  0x29   : > { %p504_p13 = pnand %p502_p0, %p499_p8 }
  0x2b   : > { %507 = shalt.err (!%p504_p13)
}
  0x2c   : > { %s660_s11 = smov [#allocation2]   ;;  %s980_s26 = smov (%p759_p1, %s32_s26), 0 }
  0x2d   : > { %430 = dma.hbm_to_smem (!%p755_p3), %s964_s0, 32, %s660_s11, [#allocation5]  }
  0x2e   : > { %s948_s4 = sshll.u32 %s772_s30, 3  ;;  %s60_s5 = ssub.s32 %s654_s16, %s980_s26 }
  0x2f   : > { %p63_p8 = scmp.eq.s32.totalorder %s60_s5, 0  ;;  %s404_s27 = sshll.u32 %s654_s16, 7 }
  0x30   : > { %s965_s1 = sld [smem:[#allocation15_spill]]  ;;  %s171_s9 = scalar_lea.vmem [#allocation6], %s948_s4 }
  0x31   : > { %s179_s10 = sshll.u32 %s171_s9, 4  ;;  %p814_p11 = pnand %p443_p5, %p766_p4  ;;  %s808_s10 = int_to_ptr.vmem [resolvable:$true] %s179_s10 }
  0x32   : > { %s806_s28 = scalar_select %p63_p8, %s646_s14, %s65_s25  }
  0x33   : > { %s821_s5 = scalar_lea.hbm %s946_s2, %s404_s27  ;;  %s168_s6 = scalar_lea.sflag [#allocation3], %s772_s30 }
  0x34   : > { %p510_p1 = pneg %p814_p11 }
  0x36   : > { %s801_s8 = scalar_lea.hbm %s965_s1, %s404_s27  ;;  %s513_s9 = scalar_lea.hbm %s965_s1, 256 }
  0x37   : > { %s508_s7 = scalar_lea.hbm %s801_s8, 128  ;;  %p514_p4 = scmp.lt.u32.totalorder %s801_s8, %s965_s1 }
  0x38   : > { %p509_p3 = scmp.ne.s32.totalorder %s801_s8, %s508_s7  ;;  %p515_p5 = scmp.lt.u32.totalorder %s513_s9, %s508_s7 }
  0x39   : > { %p517_p13 = scmp.lt.u32.totalorder %s508_s7, %s801_s8 }
  0x3a   : > { %p511_p9 = pnand %p510_p1, %p509_p3  ;;  %p516_p0 = por %p515_p5, %p514_p4 }
  0x3c   : > { %p512_p12 = pneg %p511_p9  ;;  %p518_p8 = por %p517_p13, %p516_p0 }
  0x3e   : > { %p519_p7 = pnand %p518_p8, %p512_p12 }
  0x40   : > { %522 = shalt.err (!%p519_p7)
}
  0x41   : > { %s523_s27 = scalar_lea.vmem %s808_s10, 128  ;;  %s661_s18 = smov [#allocation6]  }
  0x42   : > { %p524_p3 = scmp.ne.s32.totalorder %s808_s10, %s523_s27  ;;  %s528_s19 = sshll.u32 %s661_s18, 4  ;;  %s529_s19 = int_to_ptr.vmem [resolvable:$false] %s528_s19 }
  0x43   : > { %s530_s0 = scalar_lea.vmem %s529_s19, 256  ;;  %p531_p2 = scmp.lt.s32.totalorder %s808_s10, %s529_s19 }
  0x44   : > { %p526_p9 = pnand %p524_p3, %p510_p1  ;;  %p532_p4 = scmp.lt.s32.totalorder %s530_s0, %s523_s27 }
  0x46   : > { %p527_p6 = pneg %p526_p9  ;;  %p533_p5 = por %p532_p4, %p531_p2 }
  0x48   : > { %p534_p0 = pnand %p533_p5, %p527_p6 }
  0x4a   : > { %537 = shalt.err (!%p534_p0)
}
  0x4b   : > { %434 = dma.hbm_to_vmem [thread:$0]  (!%p814_p11), %s801_s8, 128, %s808_s10, %s168_s6  }
  0x4c   : > { %s967_s4 = sshll.u32 %s772_s30, 3  ;;  %s187_s29 = scalar_lea.sflag [#allocation8], %s772_s30 }
  0x4d   : > { %s190_s7 = scalar_lea.vmem [#allocation7], %s967_s4  ;;  %s538_s9 = scalar_lea.hbm %s821_s5, 128 }
  0x4e   : > { %s198_s25 = sshll.u32 %s190_s7, 4  ;;  %p539_p2 = scmp.ne.s32.totalorder %s821_s5, %s538_s9  ;;  %s199_s25 = int_to_ptr.vmem [resolvable:$true] %s198_s25 }
  0x4f   : > { %s543_s19 = scalar_lea.hbm %s946_s2, 256  ;;  %p544_p12 = scmp.lt.u32.totalorder %s821_s5, %s946_s2 }
  0x50   : > { %p541_p6 = pnand %p539_p2, %p510_p1  ;;  %p545_p13 = scmp.lt.u32.totalorder %s543_s19, %s538_s9 }
  0x51   : > { %p547_p3 = scmp.lt.u32.totalorder %s538_s9, %s821_s5 }
  0x52   : > { %p542_p7 = pneg %p541_p6  ;;  %p546_p8 = por %p545_p13, %p544_p12 }
  0x54   : > { %p548_p9 = por %p547_p3, %p546_p8 }
  0x56   : > { %p549_p4 = pnand %p548_p9, %p542_p7 }
  0x58   : > { %552 = shalt.err (!%p549_p4)
}
  0x59   : > { %s553_s30 = scalar_lea.vmem %s199_s25, 128  ;;  %s662_s8 = smov [#allocation7]  }
  0x5a   : > { %p554_p5 = scmp.ne.s32.totalorder %s199_s25, %s553_s30  ;;  %s558_s10 = sshll.u32 %s662_s8, 4  ;;  %s559_s10 = int_to_ptr.vmem [resolvable:$false] %s558_s10 }
  0x5b   : > { %s560_s6 = scalar_lea.vmem %s559_s10, 256  ;;  %p561_p6 = scmp.lt.s32.totalorder %s199_s25, %s559_s10 }
  0x5c   : > { %p556_p0 = pnand %p554_p5, %p510_p1  ;;  %p562_p10 = scmp.lt.s32.totalorder %s560_s6, %s553_s30 }
  0x5e   : > { %p557_p2 = pneg %p556_p0  ;;  %p563_p12 = por %p562_p10, %p561_p6 }
  0x60   : > { %p564_p13 = pnand %p563_p12, %p557_p2 }
  0x62   : > { %567 = shalt.err (!%p564_p13)
}
  0x63   : > { %437 = dma.hbm_to_vmem [thread:$0]  (!%p814_p11), %s821_s5, 128, %s199_s25, %s187_s29  }
  0x64   : > { %p968_p7 = scmp.ne.s32.totalorder %s960_s24, 0 }
  0x65   : > { %p969_p8 = scmp.ne.s32.totalorder (!%p968_p7), %s956_s20, 0 }
  0x66   : > { %207 = sbr.rel (%p968_p7) target bundleno = 145 (0x91), region = 32 }
  0x6d   : > { %621 = dma.done.wait (%p969_p8), [#allocation5], 32  }
  0x6e   : > { %623 = vsyncadd (%p969_p8), [#allocation5], 4294967264  ;;  %s878_s1 = sand.u32 1, %s642_s13   ;;  %p970_p10 = scmp.ne.s32.totalorder %s957_s21, 0 }
  0x6f   : > { %s409_s4 = sshll.u32 %s878_s1, 3  ;;  %s214_s7 = scalar_lea.sflag [#allocation3], %s878_s1 }
  0x70   : > { %s217_s11 = scalar_lea.vmem [#allocation6], %s409_s4 }
  0x71   : > { %625 = dma.done.wait (%p970_p10), %s214_s7, 128  }
  0x72   : > { %627 = vsyncadd (%p970_p10), %s214_s7, 4294967168  ;;  %s223_s24 = scalar_lea.sflag [#allocation8], %s878_s1  ;;  %s226_s5 = scalar_lea.vmem [#allocation7], %s409_s4 }
  0x73   : > { %629 = dma.done.wait (%p970_p10), %s223_s24, 128  }
  0x74   : > { %631 = vsyncadd (%p970_p10), %s223_s24, 4294967168 }
  0x75   : > { %231 = sfence }
  0x76   : > { %s412_s20 = sshll.u32 %s650_s15, 7  ;;  %v259_v0 = vld [vmem:[%s217_s11] sm:$0xff]  ;;  %v260_v1 = vld [vmem:[%s226_s5] sm:$0xff]  ;;  %s254_s27 = scalar_lea.vmem [#allocation9], %s409_s4 }
  0x77   : > { %s256_s25 = sld [smem:[#allocation2 + %s412_s20]]  ;;  %s257_s29 = sadd.s32 1, %s412_s20 }
  0x78   : > { %s258_s9 = sld [smem:[#allocation2 + %s257_s29]]  ;;  %s282_s18 = sshll.u32 %s254_s27, 4  ;;  %s892_s18 = int_to_ptr.vmem [resolvable:$true] %s282_s18 }
  0x79   : > { %s897_s19 = scalar_lea.hbm %s947_s3, %s412_s20  ;;  %s268_s0 = scalar_lea.sflag [#allocation4], %s878_s1 }
  0x7a   : > { %s568_s30 = scalar_lea.vmem %s892_s18, 128  ;;  %p971_p1 = scmp.ne.s32.totalorder %s958_s22, 0 }
  0x7b   : > { %p569_p11 = scmp.ne.s32.totalorder %s892_s18, %s568_s30  ;;  %s663_s8 = smov [#allocation9]  }
  0x7c   : > { %s572_s10 = sshll.u32 %s663_s8, 4  ;;  %s573_s10 = int_to_ptr.vmem [resolvable:$false] %s572_s10 }
  0x7d   : > { %v261_v2 = vstv %s256_s25  ;;  %p570_p3 = pnand %p569_p11, %p971_p1  ;;  %s574_s6 = scalar_lea.vmem %s573_s10, 256 }
  0x7e   : > { %v262_v3 = vmul.f32 %v261_v2, %v259_v0  ;;  %v263_v4 = vstv %s258_s9  ;;  %p575_p4 = scmp.lt.s32.totalorder %s892_s18, %s573_s10  ;;  %p576_p5 = scmp.lt.s32.totalorder %s574_s6, %s568_s30 }
  0x7f   : > { %v264_v5 = vmul.f32 %v263_v4, %v260_v1  ;;  %p571_p9 = pneg %p570_p3 }
  0x80   : > { %p577_p0 = por %p576_p5, %p575_p4 }
  0x81   : > { %v265_v6 = vadd.f32 %v264_v5, %v262_v3 }
  0x82   : > { %p578_p2 = pnand %p577_p0, %p571_p9 }
  0x83   : > { %266 = vst [vmem:[%s254_s27] sm:$0xff] %v265_v6 }
  0x84   : > { %581 = shalt.err (!%p578_p2)
}
  0x85   : > { %s582_s1 = scalar_lea.hbm %s897_s19, 128  ;;  %s586_s11 = scalar_lea.hbm %s947_s3, 256 }
  0x86   : > { %p583_p6 = scmp.ne.s32.totalorder %s897_s19, %s582_s1  ;;  %p587_p7 = scmp.lt.u32.totalorder %s897_s19, %s947_s3 }
  0x87   : > { %p588_p8 = scmp.lt.u32.totalorder %s586_s11, %s582_s1  ;;  %p590_p11 = scmp.lt.u32.totalorder %s582_s1, %s897_s19 }
  0x88   : > { %p584_p12 = pnand %p583_p6, %p971_p1 }
  0x89   : > { %p589_p10 = por %p588_p8, %p587_p7 }
  0x8a   : > { %p585_p13 = pneg %p584_p12 }
  0x8b   : > { %p591_p3 = por %p590_p11, %p589_p10 }
  0x8d   : > { %p592_p9 = pnand %p591_p3, %p585_p13 }
  0x8f   : > { %595 = shalt.err (!%p592_p9)
}
  0x90   : > { %425 = dma.vmem_to_hbm [thread:$0]  (%p971_p1), %s892_s18, 128, %s897_s19, %s268_s0  }
  0x91 PF: > { %s294_s20 = sand.u32 1, %s638_s12   ;;  %p972_p4 = scmp.ne.s32.totalorder %s959_s23, 0 }
  0x92   : > { %p973_p5 = scmp.ge.s32.totalorder %s658_s17, 2  ;;  %s295_s25 = scalar_lea.sflag [#allocation4], %s294_s20 }
  0x94   : > { %p439_p0 = pnand %p973_p5, %p972_p4 }
  0x96   : > { %633 = dma.done.wait (!%p439_p0), %s295_s25, 128  }
  0x97   : > { %635 = vsyncadd (!%p439_p0), %s295_s25, 4294967168  ;;  %s23_s17 = sadd.s32 1, %s658_s17   ;;  %s974_s12 = smov %s642_s13 }
  0x98   : > { %p20_p2 = scmp.ge.s32.totalorder %s23_s17, 4   ;;  %s975_s13 = smov %s646_s14 }
  0x99   : > { %s976_s14 = smov %s806_s28  ;;  %s977_s15 = smov %s654_s16 }
  0x9a   : > { %s978_s16 = smov %s980_s26  ;;  %22 = sbr.rel (!%p20_p2) target bundleno = 12 (0xc), region = 95 }
  0xa1   :  { %300 = vsyncpa [#allocation3], 1 }
  0xa2   :  { %302 = vsyncpa [#allocation3 + $0x1], 1 }
  0xa3   :  { %303 = vsyncpa [#allocation8], 1 }
  0xa4   :  { %305 = vsyncpa [#allocation8 + $0x1], 1 }
  0xa5   :  { %306 = vsyncpa [#allocation4], 1 }
  0xa6   :  { %308 = vsyncpa [#allocation4 + $0x1], 1 }
  0xa7   :  { %309 = vsyncpa [#allocation5], 1 }
  0xa8   :  { %311 = vsyncpa [#allocation5 + $0x1], 1 }

</bundles_post_ra>
